<compile_context>
chip_gen: v5e
topology: v5e:2x2
jax: 0.10.0
libtpu: 0.0.40
codegen_flags: <defaults>
</compile_context>

<pallas_src>
import functools

import jax
import jax.numpy as jnp
from jax.experimental import pallas as pl
from jax.experimental.pallas import tpu as pltpu

_GELU_C = 0.7978845608028654  # sqrt(2/pi)


def _round_up(x: int, m: int) -> int:
    return ((x + m - 1) // m) * m


@functools.lru_cache(maxsize=1)
def _vmem_capacity_bytes() -> int:
    """Per-TensorCore VMEM capacity; conservative fallback if the query fails."""
    try:
        return int(pltpu.get_tpu_info().vmem_capacity_bytes)
    except Exception:
        return 64 * 1024 * 1024  # v7x per-TC VMEM (smallest of the targets)


def _gelu_tanh_f32(h):
    # gelu(approximate='tanh'): 0.5*h*(1 + tanh(sqrt(2/pi)*(h + 0.044715*h^3)))
    h2 = h * h
    return 0.5 * h * (1.0 + jnp.tanh(_GELU_C * (h + 0.044715 * h * h2)))


# ---------------- resident-weights kernel (grid = (M/tm,)) ------------------
def _mlp_kernel_resident(x_ref, w1_ref, b1_ref, w2_ref, b2_ref, o_ref):
    h = jnp.dot(x_ref[...], w1_ref[...], preferred_element_type=jnp.float32)
    h = h + b1_ref[...].astype(jnp.float32)
    g = _gelu_tanh_f32(h)
    out = jnp.dot(g.astype(w2_ref.dtype), w2_ref[...],
                  preferred_element_type=jnp.float32)
    o_ref[...] = (out + b2_ref[...].astype(jnp.float32)).astype(o_ref.dtype)


# ------------- streamed-intermediate kernel (grid = (M/tm, I/ti)) -----------
def _mlp_kernel_stream(x_ref, w1_ref, b1_ref, w2_ref, b2_ref, o_ref, acc_ref):
    k = pl.program_id(1)

    @pl.when(k == 0)
    def _init():
        acc_ref[...] = jnp.zeros_like(acc_ref)

    h = jnp.dot(x_ref[...], w1_ref[...], preferred_element_type=jnp.float32)
    h = h + b1_ref[...].astype(jnp.float32)
    g = _gelu_tanh_f32(h)
    acc_ref[...] += jnp.dot(g.astype(w2_ref.dtype), w2_ref[...],
                            preferred_element_type=jnp.float32)

    @pl.when(k == pl.num_programs(1) - 1)
    def _store():
        o_ref[...] = (acc_ref[...] + b2_ref[...].astype(jnp.float32)).astype(o_ref.dtype)


def _stream_vmem_bytes(tm, ti, H, x_bytes, w_bytes):
    return (2 * (H * ti + ti * H + ti + H) * w_bytes   # double-buffered W1/W2/b1/b2 slabs
            + 2 * 2 * tm * H * x_bytes                 # x in + out tiles, double-buffered
            + tm * H * 4                               # f32 accumulator scratch
            + 3 * tm * ti * 4)                         # f32 fc1 / GELU intermediates


def _resident_vmem_bytes(tm, H, I, x_bytes, w_bytes):
    return (2 * (H * I + I * H + I + H) * w_bytes      # W1/W2/b1/b2 (2-buffer worst case)
            + 2 * 2 * tm * H * x_bytes                 # x in + out tiles, double-buffered
            + 3 * tm * I * 4)                          # f32 fc1 / GELU intermediates


@functools.partial(jax.jit, static_argnames=("tm", "ti", "force_stream"))
def siglip_mlp(hidden_states, w1, b1, w2, b2, *, tm: int = 512, ti: int = 2048,
               force_stream: bool = False):
    """SiglipMLP forward: fc2(gelu_tanh(fc1(x))).

    hidden_states: (B, S, H)
    w1: (H, I)   b1: (I,) or (1, I)  -- fc1 weight (pre-transposed vs nn.Linear) / bias
    w2: (I, H)   b2: (H,) or (1, H)  -- fc2 weight (pre-transposed vs nn.Linear) / bias

    Use bf16 operands for full MXU rate; accumulation is always f32.
    `force_stream` exists for testing / benchmarking the streaming path.
    """
    B, S, H = hidden_states.shape
    I = w1.shape[1]
    M = B * S
    x_bytes = hidden_states.dtype.itemsize
    w_bytes = w1.dtype.itemsize

    b1 = b1.reshape(1, I)
    b2 = b2.reshape(1, H)
    x2d = hidden_states.reshape(M, H)

    vmem_cap = _vmem_capacity_bytes()
    vmem_budget = int(vmem_cap * 0.7)  # leave headroom per TensorCore

    # Row tile: large (streamed weights are re-read once per row tile, so the
    # arithmetic intensity is ~tm flops/byte), but keep >=2 row tiles on big
    # inputs so both v7x TensorCores get work on the "parallel" axis.
    grid_m_min = 2 if M >= 1024 else 1
    tm_eff = max(8, min(tm, _round_up(pl.cdiv(M, grid_m_min), 8)))
    grid_m = pl.cdiv(M, tm_eff)

    out_shape = jax.ShapeDtypeStruct((M, H), hidden_states.dtype)

    resident_bytes = _resident_vmem_bytes(tm_eff, H, I, x_bytes, w_bytes)
    use_resident = (not force_stream) and (resident_bytes <= vmem_budget)

    if use_resident:
        vmem_limit = int(min(resident_bytes + (16 << 20), vmem_cap))
        out2d = pl.pallas_call(
            _mlp_kernel_resident,
            out_shape=out_shape,
            grid_spec=pltpu.PrefetchScalarGridSpec(
                num_scalar_prefetch=0,
                grid=(grid_m,),
                in_specs=[
                    pl.BlockSpec((tm_eff, H), lambda i: (i, 0)),   # x rows
                    pl.BlockSpec((H, I), lambda i: (0, 0)),        # W1 (VMEM-resident)
                    pl.BlockSpec((1, I), lambda i: (0, 0)),        # b1
                    pl.BlockSpec((I, H), lambda i: (0, 0)),        # W2 (VMEM-resident)
                    pl.BlockSpec((1, H), lambda i: (0, 0)),        # b2
                ],
                out_specs=pl.BlockSpec((tm_eff, H), lambda i: (i, 0)),
            ),
            compiler_params=pltpu.CompilerParams(
                dimension_semantics=("parallel",),
                vmem_limit_bytes=vmem_limit,
            ),
        )(x2d, w1, b1, w2, b2)
        return out2d.reshape(B, S, H)

    # ---- streaming: slab the intermediate dim over an "arbitrary" grid axis ----
    ti_max = max(128, (min(ti, _round_up(I, 128)) // 128) * 128)
    if I <= ti_max:
        ti_eff = I  # single slab (weights effectively resident for this call)
    else:
        ti_eff = ti_max
        # Shrink the slab until the per-step working set fits the VMEM budget.
        while ti_eff > 128 and _stream_vmem_bytes(tm_eff, ti_eff, H,
                                                  x_bytes, w_bytes) > vmem_budget:
            ti_eff -= 128
        # Prefer a slab width that divides I exactly (avoids the weight-pad copy).
        for cand in range(ti_eff, 127, -128):
            if I % cand == 0:
                ti_eff = cand
                break

    I_pad = _round_up(I, ti_eff)
    if I_pad != I:
        # Zero-padding the contraction dim is exact: gelu(0) == 0 and the padded
        # W2 rows are zero, so padded slabs contribute nothing to the output.
        # TODO(synk): for production, pre-pad the weights once outside the jit
        # instead of re-copying ~2*H*I weight elements every forward call.
        w1 = jnp.pad(w1, ((0, 0), (0, I_pad - I)))
        b1 = jnp.pad(b1, ((0, 0), (0, I_pad - I)))
        w2 = jnp.pad(w2, ((0, I_pad - I), (0, 0)))

    stream_bytes = _stream_vmem_bytes(tm_eff, ti_eff, H, x_bytes, w_bytes)
    vmem_limit = int(min(stream_bytes + (16 << 20), vmem_cap))

    out2d = pl.pallas_call(
        _mlp_kernel_stream,
        out_shape=out_shape,
        grid_spec=pltpu.PrefetchScalarGridSpec(
            num_scalar_prefetch=0,
            grid=(grid_m, I_pad // ti_eff),
            in_specs=[
                pl.BlockSpec((tm_eff, H), lambda i, k: (i, 0)),    # x rows
                pl.BlockSpec((H, ti_eff), lambda i, k: (0, k)),    # W1 slab
                pl.BlockSpec((1, ti_eff), lambda i, k: (0, k)),    # b1 slab
                pl.BlockSpec((ti_eff, H), lambda i, k: (k, 0)),    # W2 slab
                pl.BlockSpec((1, H), lambda i, k: (0, 0)),         # b2
            ],
            out_specs=pl.BlockSpec((tm_eff, H), lambda i, k: (i, 0)),
            scratch_shapes=[pltpu.VMEM((tm_eff, H), jnp.float32)],
        ),
        compiler_params=pltpu.CompilerParams(
            dimension_semantics=("parallel", "arbitrary"),
            vmem_limit_bytes=vmem_limit,
        ),
    )(x2d, w1, b1, w2, b2)
    return out2d.reshape(B, S, H)


# ------------------------------ reference ----------------------------------
def _gelu_tanh_ref(x):
    return 0.5 * x * (1.0 + jnp.tanh(_GELU_C * (x + 0.044715 * x ** 3)))


def _mlp_ref(x, w1, b1, w2, b2):
    B, S, H = x.shape
    xf = x.reshape(-1, H).astype(jnp.float32)
    h = _gelu_tanh_ref(xf @ w1.astype(jnp.float32) + b1.reshape(1, -1).astype(jnp.float32))
    out = h @ w2.astype(jnp.float32) + b2.reshape(1, -1).astype(jnp.float32)
    return out.reshape(B, S, H)


if __name__ == "__main__":
    key = jax.random.PRNGKey(0)
    kx, kw1, kb1, kw2, kb2, kx2, kx3, kw3, kw4 = jax.random.split(key, 9)

    # Config A: hidden=32, intermediate=64 (resident-weights path).
    H, I = 32, 64
    w1 = jax.random.normal(kw1, (H, I), dtype=jnp.float32) * 0.05
    b1 = jax.random.normal(kb1, (1, I), dtype=jnp.float32) * 0.01
    w2 = jax.random.normal(kw2, (I, H), dtype=jnp.float32) * 0.05
    b2 = jax.random.normal(kb2, (1, H), dtype=jnp.float32) * 0.01

    # 1) aligned rows (B=2, S=8 -> M=16), resident path.
    x = jax.random.normal(kx, (2, 8, H), dtype=jnp.float32)
    out = jax.block_until_ready(siglip_mlp(x, w1, b1, w2, b2))
    ref = _mlp_ref(x, w1, b1, w2, b2)
    assert jnp.allclose(out, ref, atol=1e-4, rtol=1e-4), "mismatch (resident, aligned)"

    # 2) ragged rows (B=2, S=7 -> M=14), exercises masked partial row blocks.
    x2 = jax.random.normal(kx2, (2, 7, H), dtype=jnp.float32)
    out2 = jax.block_until_ready(siglip_mlp(x2, w1, b1, w2, b2))
    ref2 = _mlp_ref(x2, w1, b1, w2, b2)
    assert jnp.allclose(out2, ref2, atol=1e-4, rtol=1e-4), "mismatch (resident, ragged)"

    # 3) streaming path, f32 (H=128, I=256, ti=128 -> 2 slabs + accumulator).
    H3, I3 = 128, 256
    w1s = jax.random.normal(kw3, (H3, I3), dtype=jnp.float32) * 0.05
    b1s = jnp.full((1, I3), 0.01, jnp.float32)
    w2s = jax.random.normal(kw4, (I3, H3), dtype=jnp.float32) * 0.05
    b2s = jnp.full((1, H3), -0.01, jnp.float32)
    x3 = jax.random.normal(kx3, (2, 8, H3), dtype=jnp.float32)
    out3 = jax.block_until_ready(
        siglip_mlp(x3, w1s, b1s, w2s, b2s, ti=128, force_stream=True))
    ref3 = _mlp_ref(x3, w1s, b1s, w2s, b2s)
    assert jnp.allclose(out3, ref3, atol=1e-4, rtol=1e-4), "mismatch (streaming)"

    # 4) streaming path, bf16, I % 128 != 0 (exercises zero-padded weight slabs).
    H4, I4 = 64, 200
    w1b = (jax.random.normal(kw1, (H4, I4), dtype=jnp.float32) * 0.05).astype(jnp.bfloat16)
    b1b = (jax.random.normal(kb1, (1, I4), dtype=jnp.float32) * 0.01).astype(jnp.bfloat16)
    w2b = (jax.random.normal(kw2, (I4, H4), dtype=jnp.float32) * 0.05).astype(jnp.bfloat16)
    b2b = (jax.random.normal(kb2, (1, H4), dtype=jnp.float32) * 0.01).astype(jnp.bfloat16)
    x4 = jax.random.normal(kx2, (2, 9, H4), dtype=jnp.float32).astype(jnp.bfloat16)
    out4 = jax.block_until_ready(
        siglip_mlp(x4, w1b, b1b, w2b, b2b, ti=128, force_stream=True))
    ref4 = _mlp_ref(x4, w1b, b1b, w2b, b2b)
    assert jnp.allclose(out4.astype(jnp.float32), ref4, atol=3e-2, rtol=3e-2), \
        "mismatch (streaming, bf16 + padded I)"

    print("KERNEL_OK")
</pallas_src>

<mosaic_0001>
module attributes {stable_mosaic.version = 11 : i64} {
  func.func @_mlp_kernel_resident(%arg0: i32, %arg1: memref<16x32xf32, #tpu.memory_space<vmem>>, %arg2: memref<32x64xf32, #tpu.memory_space<vmem>>, %arg3: memref<1x64xf32, #tpu.memory_space<vmem>>, %arg4: memref<64x32xf32, #tpu.memory_space<vmem>>, %arg5: memref<1x32xf32, #tpu.memory_space<vmem>>, %arg6: memref<16x32xf32, #tpu.memory_space<vmem>>) attributes {dimension_semantics = [#tpu.dimension_semantics<parallel>], iteration_bounds = array<i64: 1>, scalar_prefetch = 0 : i64, scratch_operands = 0 : i64, tpu.core_type = #tpu.core_type<tc>, window_params = [{transform_indices = @transform_0, window_bounds = array<i64: 16, 32>}, {pipeline_mode = #tpu.pipeline_mode<synchronous>, transform_indices = @transform_1, window_bounds = array<i64: 32, 64>}, {pipeline_mode = #tpu.pipeline_mode<synchronous>, transform_indices = @transform_2, window_bounds = array<i64: 1, 64>}, {pipeline_mode = #tpu.pipeline_mode<synchronous>, transform_indices = @transform_3, window_bounds = array<i64: 64, 32>}, {pipeline_mode = #tpu.pipeline_mode<synchronous>, transform_indices = @transform_4, window_bounds = array<i64: 1, 32>}, {transform_indices = @transform_5, window_bounds = array<i64: 16, 32>}]} {
    %c0 = arith.constant 0 : index
    %c0_0 = arith.constant 0 : index
    %0 = vector.load %arg1[%c0, %c0_0] : memref<16x32xf32, #tpu.memory_space<vmem>>, vector<16x32xf32>
    %c0_1 = arith.constant 0 : index
    %c0_2 = arith.constant 0 : index
    %1 = vector.load %arg2[%c0_1, %c0_2] : memref<32x64xf32, #tpu.memory_space<vmem>>, vector<32x64xf32>
    %cst = arith.constant dense<0.000000e+00> : vector<16x64xf32>
    %2 = tpu.matmul %0, %1, %cst {dimension_numbers = #tpu.dot_dimension_numbers<[1], [0], [0], [1], [0, 0, 1, 1], [], []>} : vector<16x32xf32>, vector<32x64xf32>, vector<16x64xf32> -> vector<16x64xf32>
    %c0_3 = arith.constant 0 : index
    %c0_4 = arith.constant 0 : index
    %3 = vector.load %arg3[%c0_3, %c0_4] : memref<1x64xf32, #tpu.memory_space<vmem>>, vector<1x64xf32>
    %4 = vector.broadcast %3 : vector<1x64xf32> to vector<16x64xf32>
    %5 = arith.addf %2, %4 : vector<16x64xf32>
    %6 = arith.mulf %5, %5 : vector<16x64xf32>
    %cst_5 = arith.constant 5.000000e-01 : f32
    %7 = vector.broadcast %cst_5 : f32 to vector<16x64xf32>
    %8 = arith.mulf %7, %5 : vector<16x64xf32>
    %cst_6 = arith.constant 4.471500e-02 : f32
    %9 = vector.broadcast %cst_6 : f32 to vector<16x64xf32>
    %10 = arith.mulf %9, %5 : vector<16x64xf32>
    %11 = arith.mulf %10, %6 : vector<16x64xf32>
    %12 = arith.addf %5, %11 : vector<16x64xf32>
    %cst_7 = arith.constant 0.797884583 : f32
    %13 = vector.broadcast %cst_7 : f32 to vector<16x64xf32>
    %14 = arith.mulf %13, %12 : vector<16x64xf32>
    %15 = math.tanh %14 : vector<16x64xf32>
    %cst_8 = arith.constant 1.000000e+00 : f32
    %16 = vector.broadcast %cst_8 : f32 to vector<16x64xf32>
    %17 = arith.addf %16, %15 : vector<16x64xf32>
    %18 = arith.mulf %8, %17 : vector<16x64xf32>
    %c0_9 = arith.constant 0 : index
    %c0_10 = arith.constant 0 : index
    %19 = vector.load %arg4[%c0_9, %c0_10] : memref<64x32xf32, #tpu.memory_space<vmem>>, vector<64x32xf32>
    %cst_11 = arith.constant dense<0.000000e+00> : vector<16x32xf32>
    %20 = tpu.matmul %18, %19, %cst_11 {dimension_numbers = #tpu.dot_dimension_numbers<[1], [0], [0], [1], [0, 0, 1, 1], [], []>} : vector<16x64xf32>, vector<64x32xf32>, vector<16x32xf32> -> vector<16x32xf32>
    %c0_12 = arith.constant 0 : index
    %c0_13 = arith.constant 0 : index
    %21 = vector.load %arg5[%c0_12, %c0_13] : memref<1x32xf32, #tpu.memory_space<vmem>>, vector<1x32xf32>
    %22 = vector.broadcast %21 : vector<1x32xf32> to vector<16x32xf32>
    %23 = arith.addf %20, %22 : vector<16x32xf32>
    %c0_14 = arith.constant 0 : index
    %c0_15 = arith.constant 0 : index
    %24 = vector.load %arg6[%c0_14, %c0_15] : memref<16x32xf32, #tpu.memory_space<vmem>>, vector<16x32xf32>
    tpu.vector_store %arg6[%c0_14, %c0_15], %23 {strides = array<i32>} : memref<16x32xf32, #tpu.memory_space<vmem>>, vector<16x32xf32>,
    return
  }
  func.func @transform_0(%arg0: i32) -> (i32, i32) {
    %c0_i32 = arith.constant 0 : i32
    %c0_i32_0 = arith.constant 0 : i32
    return %arg0, %c0_i32 : i32, i32
  }
  func.func @transform_1(%arg0: i32) -> (i32, i32) {
    %c0_i32 = arith.constant 0 : i32
    %c0_i32_0 = arith.constant 0 : i32
    %c0_i32_1 = arith.constant 0 : i32
    return %c0_i32, %c0_i32_0 : i32, i32
  }
  func.func @transform_2(%arg0: i32) -> (i32, i32) {
    %c0_i32 = arith.constant 0 : i32
    %c0_i32_0 = arith.constant 0 : i32
    %c0_i32_1 = arith.constant 0 : i32
    return %c0_i32, %c0_i32_0 : i32, i32
  }
  func.func @transform_3(%arg0: i32) -> (i32, i32) {
    %c0_i32 = arith.constant 0 : i32
    %c0_i32_0 = arith.constant 0 : i32
    %c0_i32_1 = arith.constant 0 : i32
    return %c0_i32, %c0_i32_0 : i32, i32
  }
  func.func @transform_4(%arg0: i32) -> (i32, i32) {
    %c0_i32 = arith.constant 0 : i32
    %c0_i32_0 = arith.constant 0 : i32
    %c0_i32_1 = arith.constant 0 : i32
    return %c0_i32, %c0_i32_0 : i32, i32
  }
  func.func @transform_5(%arg0: i32) -> (i32, i32) {
    %c0_i32 = arith.constant 0 : i32
    %c0_i32_0 = arith.constant 0 : i32
    return %arg0, %c0_i32 : i32, i32
  }
}

</mosaic_0001>

<bundles_post_ra>
// kernel: siglip_mlp.1
= control target key start
LH: loop header
LB: loop body
LE: loop exit
PB: predicated region body
PF: predicated region fallthrough
CT: control target
= control target key end

     0   :  { %s280_s0 = inlined_call_operand.vmem [shape: f32[16,32], index: 0, kind: input, shape index: {}]   ;;  %s281_s1 = inlined_call_operand.vmem [shape: f32[32,64], index: 1, kind: input, shape index: {}]   ;;  %s282_s2 = inlined_call_operand.vmem [shape: f32[1,64], index: 2, kind: input, shape index: {}]   ;;  %s283_s3 = inlined_call_operand.vmem [shape: f32[64,32], index: 3, kind: input, shape index: {}]   ;;  %s284_s4 = inlined_call_operand.vmem [shape: f32[1,32], index: 4, kind: input, shape index: {}]   ;;  %s285_s5 = inlined_call_operand.hbm [shape: f32[16,32], index: 5, kind: output, shape index: {}]  }
   0x1   :  { %v26_v0 = vld [vmem:[%s281_s1 + $0x18] sm:$0xff]  ;;  %v25_v1 = vld [vmem:[%s281_s1 + $0x10] sm:$0xff]  ;;  %v24_v2 = vld [vmem:[%s281_s1 + $0x8] sm:$0xff] }
   0x2   :  { %50 = vmatpush.msra.mxu0 %v26_v0  ;;  %145 = vmatpush.msra.mxu3 %v26_v0 }
   0x4   :  { %51 = vmatpush.msra.mxu0 %v25_v1  ;;  %146 = vmatpush.msra.mxu3 %v25_v1 }
   0x5   :  { %10 = vsyncpa [#allocation3], 0  ;;  %v23_v3 = vld [vmem:[%s281_s1] sm:$0xff]  ;;  %vm31_vm0 = vcmask 261120   ;;  %v22_v5 = vld [vmem:[%s280_s0 + $0x8] sm:$0xff]  ;;  %vm91_vm1 = vcmask 523264  }
   0x6   :  { %52 = vmatpush.msra.mxu0 %v24_v2  ;;  %147 = vmatpush.msra.mxu3 %v24_v2  ;;  %v21_v4 = vld [vmem:[%s280_s0] sm:$0xff]  ;;  %v86_v6 = vld [vmem:[%s283_s3 + $0x38] sm:$0xff]  ;;  %v85_v7 = vld [vmem:[%s283_s3 + $0x30] sm:$0xff]  ;;  %s192_s21 = smov [#allocation2]   ;;  %s129_s25 = sshll.u32 %s285_s5, 4  ;;  %s130_s25 = int_to_ptr.hbm [resolvable:$true] %s129_s25 }
   0x7   :  { %106 = vmatpush.msra.mxu1 %v86_v6  ;;  %149 = vmatpush.msra.mxu2 %v86_v6  ;;  %v84_v8 = vld [vmem:[%s283_s3 + $0x28] sm:$0xff]  ;;  %v83_v9 = vld [vmem:[%s283_s3 + $0x20] sm:$0xff]  ;;  %v82_v10 = vld [vmem:[%s283_s3 + $0x18] sm:$0xff]  ;;  %s127_s22 = sshll.u32 %s192_s21, 4  ;;  %s193_s26 = smov 128   ;;  %s128_s22 = int_to_ptr.vmem [resolvable:$true] %s127_s22 }
   0x8   :  { %53 = vmatpush.msra.mxu0 %v23_v3  ;;  %148 = vmatpush.msra.mxu3 %v23_v3  ;;  %v81_v11 = vld [vmem:[%s283_s3 + $0x10] sm:$0xff]  ;;  %v80_v12 = vld [vmem:[%s283_s3 + $0x8] sm:$0xff]  ;;  %v79_v13 = vld [vmem:[%s283_s3] sm:$0xff]  ;;  %s194_s27 = smov 8  }
   0x9   :  { %141 = vmatmul.msk.f32.vlgmr.msra.gmra.mxu0 %vm31_vm0, %v21_v4  ;;  %142 = vmatmul.msk.f32.vlgmr.msra.gmra.mxu3 %vm31_vm0, %v22_v5  ;;  %v160_v14 = vld [vmem:[%s282_s2] ss:$0 sm:$0xff] }
   0xa   :  { %107 = vmatpush.msra.mxu1 %v85_v7  ;;  %150 = vmatpush.msra.mxu2 %v85_v7  ;;  %v161_v37 = vld [vmem:[%s284_s4] ss:$0 sm:$0xff] }
   0xc   :  { %108 = vmatpush.msra.mxu1 %v84_v8  ;;  %151 = vmatpush.msra.mxu2 %v84_v8 }
   0xe   :  { %109 = vmatpush.msra.mxu1 %v83_v9  ;;  %152 = vmatpush.msra.mxu2 %v83_v9 }
  0x10   :  { %110 = vmatpush.msra.mxu1 %v82_v10  ;;  %153 = vmatpush.msra.mxu2 %v82_v10 }
  0x12   :  { %111 = vmatpush.msra.mxu1 %v81_v11  ;;  %154 = vmatpush.msra.mxu2 %v81_v11 }
  0x14   :  { %112 = vmatpush.msra.mxu1 %v80_v12  ;;  %155 = vmatpush.msra.mxu2 %v80_v12 }
  0x16   :  { %113 = vmatpush.msra.mxu1 %v79_v13  ;;  %156 = vmatpush.msra.mxu2 %v79_v13 }
  0x86   :  { %v55_v15 = vpop.f32.mrf.mxu0 }
  0x87   :  { %v56_v16 = vadd.f32 %v160_v14, %v55_v15 }
  0x89   :  { %v61_v17 = vmul.f32 %v56_v16, %v56_v16  ;;  %v65_v18 = vmul.f32 0.044715, %v56_v16  ;;  %v63_v30 = vmul.f32 0.5, %v56_v16 }
  0x8b   :  { %v67_v19 = vmul.f32 %v65_v18, %v61_v17 }
  0x8c   :  { %v58_v20 = vpop.f32.mrf.mxu3 }
  0x8d   :  { %v69_v21 = vadd.f32 %v67_v19, %v56_v16  ;;  %v59_v22 = vadd.f32 %v160_v14, %v58_v20 }
  0x8f   :  { %v62_v23 = vmul.f32 %v59_v22, %v59_v22  ;;  %v66_v24 = vmul.f32 0.044715, %v59_v22  ;;  %v71_v25 = vmul.f32 0.7978846, %v69_v21  ;;  %v64_v34 = vmul.f32 0.5, %v59_v22 }
  0x91   :  { %v68_v26 = vmul.f32 %v66_v24, %v62_v23  ;;  %162 = vtanh.f32 %v71_v25 }
  0x93   :  { %v70_v27 = vadd.f32 %v68_v26, %v59_v22 }
  0x95   :  { %v72_v28 = vmul.f32 0.7978846, %v70_v27 }
  0x97   :  { %v163_v29 = vpop.eup %162  ;;  %164 = vtanh.f32 %v72_v28 }
  0x98   :  { %v75_v31 = vadd.f32 1.0, %v163_v29 }
  0x9a   :  { %v77_v32 = vmul.f32 %v75_v31, %v63_v30 }
  0x9c   :  { %143 = vmatmul.msk.f32.vlgmr.msra.gmra.mxu1 %vm91_vm1, %v77_v32 }
  0x9d   :  { %v165_v33 = vpop.eup %164 }
  0x9e   :  { %v76_v35 = vadd.f32 1.0, %v165_v33 }
  0xa0   :  { %v78_v36 = vmul.f32 %v76_v35, %v64_v34 }
  0xa2   :  { %144 = vmatmul.msk.f32.vlgmr.msra.gmra.mxu2 %vm91_vm1, %v78_v36 }
 0x119   :  { %v115_v38 = vpop.f32.mrf.mxu1 }
 0x11a   :  { %v116_v39 = vadd.f32 %v161_v37, %v115_v38 }
 0x11c   :  { %121 = vst.msk [vmem:[#allocation2] sm:$0xff] %vm31_vm0, %v116_v39 }
 0x125   :  { %v118_v40 = vpop.f32.mrf.mxu2 }
 0x126   :  { %v119_v41 = vadd.f32 %v161_v37, %v118_v40 }
 0x128   :  { %122 = vst.msk [vmem:[#allocation2 + $0x8] sm:$0xff] %vm31_vm0, %v119_v41 }
 0x129   :  { %135 = dma.vmem_to_hbm [thread:$0]  %s128_s22, 256, %s130_s25, [#allocation3], %s193_s26, %s193_s26, %s194_s27  }
 0x12a   :  { %190 = dma.done.wait [#allocation3], 256  }
 0x12b   :  { %191 = vsyncadd [#allocation3], 4294967040 }
 0x12c   :  { %140 = vsyncpa [#allocation3], 1 }

</bundles_post_ra>
